<compile_context>
chip_gen: v7x
topology: tpu7x:2x2x1
jax: 0.10.0
libtpu: 0.0.40
codegen_flags: <defaults>
</compile_context>

<pallas_src>
import jax
import jax.numpy as jnp
from jax.experimental import pallas as pl
from jax.experimental.pallas import tpu as pltpu


_NEG_INF = -1e30


def _round_up(n, m):
    return ((n + m - 1) // m) * m


def _mlp_kernel(x_ref, w1_ref, b1_ref, w2_ref, b2_ref, o_ref):
    # fc1: bf16 MXU operands, f32 accumulate; bias + sigmoid in f32.
    x_bf16 = x_ref[...].astype(jnp.bfloat16)
    w1_bf16 = w1_ref[...].astype(jnp.bfloat16)
    h = jnp.dot(x_bf16, w1_bf16, preferred_element_type=jnp.float32) + b1_ref[...]
    h = jax.nn.sigmoid(h)                                  # [TILE_B, d_hidden] f32

    # Dropout(p=0.2): identity in eval/inference mode.
    # TODO(synk): training-mode dropout (pltpu.prng_random_bits mask) not emitted.

    # fc2 + log_softmax along the last axis. Columns beyond d_out are padding:
    # zero weight columns + bias of -1e30, so they never win the max and
    # contribute ~0 to the logsumexp. Output block is lane-dense (128 cols).
    h_bf16 = h.astype(jnp.bfloat16)
    w2_bf16 = w2_ref[...].astype(jnp.bfloat16)
    logits = jnp.dot(h_bf16, w2_bf16, preferred_element_type=jnp.float32) + b2_ref[...]
    m = jnp.max(logits, axis=1, keepdims=True)
    shifted = logits - m
    lse = jnp.log(jnp.sum(jnp.exp(shifted), axis=1, keepdims=True))
    o_ref[...] = shifted - lse                             # [TILE_B, d_out_pad] f32


def net_forward(x, w1, b1, w2, b2, d_in, *, tile_b=256):
    """Pallas equivalent of Net.forward.

    x  : any shape whose element count is divisible by d_in
    w1 : [d_in, d_hidden]   (transposed vs. PyTorch's [d_hidden, d_in])
    b1 : [1, d_hidden]
    w2 : [d_hidden, d_out]  (transposed vs. PyTorch's [d_out, d_hidden])
    b2 : [1, d_out]
    """
    assert x.size % d_in == 0, "input elements must be divisible by d_in"
    x2 = jnp.reshape(x, (-1, d_in)).astype(jnp.float32)
    batch = x2.shape[0]
    d_hidden = w1.shape[1]
    d_out = w2.shape[1]

    # Lane-dense output: pad d_out up to a multiple of 128.
    d_out_pad = max(128, _round_up(d_out, 128))
    w2_pad = jnp.pad(w2.astype(jnp.float32), ((0, 0), (0, d_out_pad - d_out)))
    b2_pad = jnp.pad(b2.astype(jnp.float32), ((0, 0), (0, d_out_pad - d_out)),
                     constant_values=_NEG_INF)

    # Batch tiling: >= 8 rows per block (sublane multiple), up to tile_b rows.
    tile_b = min(tile_b, _round_up(batch, 8))
    padded_batch = _round_up(batch, tile_b)
    if padded_batch != batch:
        x2 = jnp.pad(x2, ((0, padded_batch - batch), (0, 0)))
    grid = (pl.cdiv(padded_batch, tile_b),)

    cost = pl.CostEstimate(
        flops=2 * padded_batch * (d_in * d_hidden + d_hidden * d_out_pad),
        transcendentals=padded_batch * (d_hidden + d_out_pad),
        bytes_accessed=4 * (padded_batch * d_in
                            + d_in * d_hidden + d_hidden
                            + d_hidden * d_out_pad + d_out_pad
                            + padded_batch * d_out_pad),
    )

    out = pl.pallas_call(
        _mlp_kernel,
        out_shape=jax.ShapeDtypeStruct((padded_batch, d_out_pad), jnp.float32),
        grid=grid,
        in_specs=[
            # x: one batch tile per grid step.
            pl.BlockSpec((tile_b, d_in), lambda i: (i, 0)),
            # Weights / biases stay VMEM-resident across all batch tiles.
            pl.BlockSpec((d_in, d_hidden), lambda i: (0, 0)),
            pl.BlockSpec((1, d_hidden), lambda i: (0, 0)),
            pl.BlockSpec((d_hidden, d_out_pad), lambda i: (0, 0)),
            pl.BlockSpec((1, d_out_pad), lambda i: (0, 0)),
        ],
        out_specs=pl.BlockSpec((tile_b, d_out_pad), lambda i: (i, 0)),
        compiler_params=pltpu.CompilerParams(
            dimension_semantics=("parallel",)),   # megacore sharding on v7x
        cost_estimate=cost,
    )(x2, w1, b1, w2_pad, b2_pad)

    # Drop batch padding rows and the lane-padding columns.
    return out[:batch, :d_out]


def init_params(key, d_in, d_hidden, d_out):
    """Deterministic init mimicking nn.Linear's U(-1/sqrt(fan_in), 1/sqrt(fan_in))."""
    k1, k2, k3, k4 = jax.random.split(key, 4)
    bound1 = 1.0 / jnp.sqrt(d_in)
    bound2 = 1.0 / jnp.sqrt(d_hidden)
    w1 = jax.random.uniform(k1, (d_in, d_hidden), jnp.float32, -bound1, bound1)
    b1 = jax.random.uniform(k2, (1, d_hidden), jnp.float32, -bound1, bound1)
    w2 = jax.random.uniform(k3, (d_hidden, d_out), jnp.float32, -bound2, bound2)
    b2 = jax.random.uniform(k4, (1, d_out), jnp.float32, -bound2, bound2)
    return w1, b1, w2, b2


def _reference_forward(x, w1, b1, w2, b2, d_in):
    x2 = jnp.reshape(x, (-1, d_in)).astype(jnp.float32)
    h = jax.nn.sigmoid(x2 @ w1 + b1)
    logits = h @ w2 + b2
    return jax.nn.log_softmax(logits, axis=1)


if __name__ == "__main__":
    d_in, d_hidden, d_out = 64, 32, 16
    key = jax.random.PRNGKey(0)
    kx, kp = jax.random.split(key)

    # Input that Net would see before its x.view(-1, d_in): (8, 4, 16) -> (8, 64)
    x = jax.random.normal(kx, (8, 4, 16), dtype=jnp.float32)
    w1, b1, w2, b2 = init_params(kp, d_in, d_hidden, d_out)

    out = net_forward(x, w1, b1, w2, b2, d_in)
    jax.block_until_ready(out)

    # Sanity: shape, prob-space row sums ~1, and agreement with a pure-JAX
    # f32 reference (bf16 MXU operands introduce only small logit error).
    ref = _reference_forward(x, w1, b1, w2, b2, d_in)
    row_sums = jnp.sum(jnp.exp(out), axis=1)
    assert out.shape == (8, d_out)
    assert bool(jnp.all(jnp.abs(row_sums - 1.0) < 1e-3))
    assert bool(jnp.max(jnp.abs(out - ref)) < 5e-2)

    print("KERNEL_OK")
</pallas_src>

<mosaic_0001>
module attributes {stable_mosaic.version = 11 : i64} {
  func.func @_mlp_kernel(%arg0: i32, %arg1: memref<8x64xf32, #tpu.memory_space<vmem>>, %arg2: memref<64x32xf32, #tpu.memory_space<vmem>>, %arg3: memref<1x32xf32, #tpu.memory_space<vmem>>, %arg4: memref<32x128xf32, #tpu.memory_space<vmem>>, %arg5: memref<1x128xf32, #tpu.memory_space<vmem>>, %arg6: memref<8x128xf32, #tpu.memory_space<vmem>>) attributes {dimension_semantics = [#tpu.dimension_semantics<parallel>], iteration_bounds = array<i64: 1>, scalar_prefetch = 0 : i64, scratch_operands = 0 : i64, tpu.core_type = #tpu.core_type<tc>, window_params = [{transform_indices = @transform_0, window_bounds = array<i64: 8, 64>}, {pipeline_mode = #tpu.pipeline_mode<synchronous>, transform_indices = @transform_1, window_bounds = array<i64: 64, 32>}, {pipeline_mode = #tpu.pipeline_mode<synchronous>, transform_indices = @transform_2, window_bounds = array<i64: 1, 32>}, {pipeline_mode = #tpu.pipeline_mode<synchronous>, transform_indices = @transform_3, window_bounds = array<i64: 32, 128>}, {pipeline_mode = #tpu.pipeline_mode<synchronous>, transform_indices = @transform_4, window_bounds = array<i64: 1, 128>}, {transform_indices = @transform_5, window_bounds = array<i64: 8, 128>}]} {
    %c0 = arith.constant 0 : index
    %c0_0 = arith.constant 0 : index
    %0 = vector.load %arg1[%c0, %c0_0] : memref<8x64xf32, #tpu.memory_space<vmem>>, vector<8x64xf32>
    %1 = arith.truncf %0 : vector<8x64xf32> to vector<8x64xbf16>
    %c0_1 = arith.constant 0 : index
    %c0_2 = arith.constant 0 : index
    %2 = vector.load %arg2[%c0_1, %c0_2] : memref<64x32xf32, #tpu.memory_space<vmem>>, vector<64x32xf32>
    %3 = arith.truncf %2 : vector<64x32xf32> to vector<64x32xbf16>
    %cst = arith.constant dense<0.000000e+00> : vector<8x32xf32>
    %4 = tpu.matmul %1, %3, %cst {dimension_numbers = #tpu.dot_dimension_numbers<[1], [0], [0], [1], [0, 0, 1, 1], [], []>} : vector<8x64xbf16>, vector<64x32xbf16>, vector<8x32xf32> -> vector<8x32xf32>
    %c0_3 = arith.constant 0 : index
    %c0_4 = arith.constant 0 : index
    %5 = vector.load %arg3[%c0_3, %c0_4] : memref<1x32xf32, #tpu.memory_space<vmem>>, vector<1x32xf32>
    %6 = vector.broadcast %5 : vector<1x32xf32> to vector<8x32xf32>
    %7 = arith.addf %4, %6 : vector<8x32xf32>
    %8 = arith.negf %7 : vector<8x32xf32>
    %9 = math.exp %8 : vector<8x32xf32>
    %cst_5 = arith.constant 1.000000e+00 : f32
    %10 = vector.broadcast %cst_5 : f32 to vector<8x32xf32>
    %11 = arith.addf %10, %9 : vector<8x32xf32>
    %12 = arith.divf %10, %11 : vector<8x32xf32>
    %13 = arith.truncf %12 : vector<8x32xf32> to vector<8x32xbf16>
    %c0_6 = arith.constant 0 : index
    %c0_7 = arith.constant 0 : index
    %14 = vector.load %arg4[%c0_6, %c0_7] : memref<32x128xf32, #tpu.memory_space<vmem>>, vector<32x128xf32>
    %15 = arith.truncf %14 : vector<32x128xf32> to vector<32x128xbf16>
    %cst_8 = arith.constant dense<0.000000e+00> : vector<8x128xf32>
    %16 = tpu.matmul %13, %15, %cst_8 {dimension_numbers = #tpu.dot_dimension_numbers<[1], [0], [0], [1], [0, 0, 1, 1], [], []>} : vector<8x32xbf16>, vector<32x128xbf16>, vector<8x128xf32> -> vector<8x128xf32>
    %c0_9 = arith.constant 0 : index
    %c0_10 = arith.constant 0 : index
    %17 = vector.load %arg5[%c0_9, %c0_10] : memref<1x128xf32, #tpu.memory_space<vmem>>, vector<1x128xf32>
    %18 = vector.broadcast %17 : vector<1x128xf32> to vector<8x128xf32>
    %19 = arith.addf %16, %18 : vector<8x128xf32>
    %cst_11 = arith.constant dense<0xFF800000> : vector<8xf32>
    %20 = vector.multi_reduction <maximumf>, %19, %cst_11 [1] : vector<8x128xf32> to vector<8xf32>
    %21 = vector.shape_cast %20 : vector<8xf32> to vector<8x1xf32>
    %22 = vector.broadcast %21 : vector<8x1xf32> to vector<8x128xf32>
    %23 = arith.subf %19, %22 : vector<8x128xf32>
    %24 = math.exp %23 : vector<8x128xf32>
    %cst_12 = arith.constant dense<0.000000e+00> : vector<8xf32>
    %25 = vector.multi_reduction <add>, %24, %cst_12 [1] : vector<8x128xf32> to vector<8xf32>
    %26 = vector.shape_cast %25 : vector<8xf32> to vector<8x1xf32>
    %27 = math.log %26 : vector<8x1xf32>
    %28 = vector.broadcast %27 : vector<8x1xf32> to vector<8x128xf32>
    %29 = arith.subf %23, %28 : vector<8x128xf32>
    %c0_13 = arith.constant 0 : index
    %c0_14 = arith.constant 0 : index
    %30 = vector.load %arg6[%c0_13, %c0_14] : memref<8x128xf32, #tpu.memory_space<vmem>>, vector<8x128xf32>
    tpu.vector_store %arg6[%c0_13, %c0_14], %29 {strides = array<i32>} : memref<8x128xf32, #tpu.memory_space<vmem>>, vector<8x128xf32>,
    return
  }
  func.func @transform_0(%arg0: i32) -> (i32, i32) {
    %c0_i32 = arith.constant 0 : i32
    %c0_i32_0 = arith.constant 0 : i32
    return %arg0, %c0_i32 : i32, i32
  }
  func.func @transform_1(%arg0: i32) -> (i32, i32) {
    %c0_i32 = arith.constant 0 : i32
    %c0_i32_0 = arith.constant 0 : i32
    %c0_i32_1 = arith.constant 0 : i32
    return %c0_i32, %c0_i32_0 : i32, i32
  }
  func.func @transform_2(%arg0: i32) -> (i32, i32) {
    %c0_i32 = arith.constant 0 : i32
    %c0_i32_0 = arith.constant 0 : i32
    %c0_i32_1 = arith.constant 0 : i32
    return %c0_i32, %c0_i32_0 : i32, i32
  }
  func.func @transform_3(%arg0: i32) -> (i32, i32) {
    %c0_i32 = arith.constant 0 : i32
    %c0_i32_0 = arith.constant 0 : i32
    %c0_i32_1 = arith.constant 0 : i32
    return %c0_i32, %c0_i32_0 : i32, i32
  }
  func.func @transform_4(%arg0: i32) -> (i32, i32) {
    %c0_i32 = arith.constant 0 : i32
    %c0_i32_0 = arith.constant 0 : i32
    %c0_i32_1 = arith.constant 0 : i32
    return %c0_i32, %c0_i32_0 : i32, i32
  }
  func.func @transform_5(%arg0: i32) -> (i32, i32) {
    %c0_i32 = arith.constant 0 : i32
    %c0_i32_0 = arith.constant 0 : i32
    return %arg0, %c0_i32 : i32, i32
  }
}

</mosaic_0001>

<bundles_post_ra>
// kernel: tpu_custom_call.1
= control target key start
LH: loop header
LB: loop body
LE: loop exit
PB: predicated region body
PF: predicated region fallthrough
CT: control target
= control target key end

     0   :  { %v244_v3 = vmov 0.0   ;;  %vm245_vm0 = vmmov 0   ;;  %s334_s0 = inlined_call_operand.vmem [shape: f32[8,64], index: 0, kind: input, shape index: {}]   ;;  %s335_s1 = inlined_call_operand.vmem [shape: f32[64,32], index: 1, kind: input, shape index: {}]   ;;  %s336_s2 = inlined_call_operand.vmem [shape: f32[1,32], index: 2, kind: input, shape index: {}]   ;;  %s337_s3 = inlined_call_operand.vmem [shape: f32[32,128], index: 3, kind: input, shape index: {}]   ;;  %s338_s4 = inlined_call_operand.vmem [shape: f32[1,128], index: 4, kind: input, shape index: {}]   ;;  %s339_s5 = inlined_call_operand.hbm [shape: f32[8,128], index: 5, kind: output, shape index: {}]  }
   0x1   :  { %v24_v0 = vld [vmem:[%s335_s1] sm:$0xff]  ;;  %v25_v1 = vld [vmem:[%s335_s1 + $0x8] sm:$0xff]  ;;  %v26_v2 = vld [vmem:[%s335_s1 + $0x10] sm:$0xff]  ;;  %189 = vmatprep.subr.bf16.mxu0 %v244_v3  ;;  %197 = vmatprep.mubr.msk.bf16.mxu0 %vm245_vm0, %v244_v3 }
   0x2   :  { %v32_v4 = vpack.c.bf16 %v25_v1, %v24_v0  ;;  %v27_v5 = vld [vmem:[%s335_s1 + $0x18] sm:$0xff]  ;;  %201 = vmatprep.subr.bf16.mxu1 %v244_v3  ;;  %205 = vmatprep.mubr.msk.bf16.mxu1 %vm245_vm0, %v244_v3 }
   0x3   :  { %v33_v6 = vpack.c.bf16 %v27_v5, %v26_v2 }
   0x4   :  { %190 = vmatpush3.bf16.msra.mxu0 %v32_v4 }
   0x5   :  { %10 = vsyncpa [#allocation3], 0  ;;  %191 = vmatprep.subr.bf16.mxu0 %v244_v3  ;;  %v28_v7 = vld [vmem:[%s335_s1 + $0x20] sm:$0xff]  ;;  %v29_v8 = vld [vmem:[%s335_s1 + $0x28] sm:$0xff]  ;;  %vm43_vm1 = vcmask 523264   ;;  %vm107_vm2 = vcmask 261120  }
   0x6   :  { %v34_v9 = vpack.c.bf16 %v29_v8, %v28_v7  ;;  %v30_v10 = vld [vmem:[%s335_s1 + $0x30] sm:$0xff]  ;;  %v31_v11 = vld [vmem:[%s335_s1 + $0x38] sm:$0xff]  ;;  %v22_v13 = vld [vmem:[%s334_s0] sm:$0xff] }
   0x7   :  { %v35_v12 = vpack.c.bf16 %v31_v11, %v30_v10  ;;  %v23_v14 = vpack.c.bf16 %v22_v13, %v22_v13  ;;  %v94_v15 = vld [vmem:[%s337_s3] sm:$0xff]  ;;  %v95_v16 = vld [vmem:[%s337_s3 + $0x8] sm:$0xff]  ;;  %v96_v17 = vld [vmem:[%s337_s3 + $0x10] sm:$0xff] }
   0x8   :  { %192 = vmatpush3.bf16.msra.mxu0 %v33_v6  ;;  %v98_v18 = vpack.c.bf16 %v95_v16, %v94_v15  ;;  %v97_v19 = vld [vmem:[%s337_s3 + $0x18] sm:$0xff]  ;;  %v176_v21 = vld [vmem:[%s336_s2] ss:$0 sm:$0xff]  ;;  %s246_s2 = smov [#allocation2]  }
   0x9   :  { %193 = vmatprep.subr.bf16.mxu0 %v244_v3  ;;  %v99_v20 = vpack.c.bf16 %v97_v19, %v96_v17  ;;  %v179_v32 = vld [vmem:[%s338_s4] ss:$0 sm:$0xff]  ;;  %s168_s20 = sshll.u32 %s246_s2, 4  ;;  %s169_s20 = int_to_ptr.vmem [resolvable:$true] %s168_s20 }
   0xa   :  { %202 = vmatpush3.bf16.msra.mxu1 %v98_v18  ;;  %s220_s4 = scalar_lea.vmem %s169_s20, 128  ;;  %p225_p1 = scmp.lt.s32.totalorder %s169_s20, %s169_s20 }
   0xb   :  { %203 = vmatprep.subr.bf16.mxu1 %v244_v3  ;;  %p221_p0 = scmp.ne.s32.totalorder %s169_s20, %s220_s4  ;;  %p226_p2 = scmp.lt.s32.totalorder %s220_s4, %s220_s4 }
   0xc   :  { %194 = vmatpush3.bf16.msra.mxu0 %v34_v9 }
   0xd   :  { %195 = vmatprep.subr.bf16.mxu0 %v244_v3  ;;  %p227_p3 = por %p226_p2, %p225_p1 }
   0xe   :  { %204 = vmatpush3.bf16.msra.mxu1 %v99_v20 }
   0xf   :  { %p228_p4 = pnand %p227_p3, %p221_p0 }
  0x10   :  { %196 = vmatpush3.bf16.msra.mxu0 %v35_v12 }
  0x13   :  { %198 = vmatmul.mubr.msk.bf16.vlgmr.msra.gmra.mrb[0].mxu0 %vm43_vm1, %v23_v14 }
  0xe6   :  { %v81_v22 = vpop.f32.mrb[0].mxu0 }
  0xe7   :  { %v82_v23 = vadd.f32 %v176_v21, %v81_v22  ;;  %v199_v24 = vpop.f32.mrb[1].mxu0 }
  0xe8   :  { %v84_v25 = vpop.f32.mrb[2].mxu0 }
  0xe9   :  { %v178_v26 = vmul.f32 -1.442695, %v82_v23  ;;  %v200_v27 = vpop.f32.mrb[3].mxu0 }
  0xeb   :  { %212 = vpow2.f32 %v178_v26 }
  0xf5   :  { %v213_v28 = vpop.eup %212 }
  0xf6   :  { %v90_v29 = vadd.f32 1.0, %v213_v28 }
  0xf8   :  { %214 = vrcp.f32 %v90_v29 }
 0x102   :  { %v215_v30 = vpop.eup %214 }
 0x103   :  { %v93_v31 = vpack.c.bf16 %v215_v30, %v215_v30 }
 0x105   :  { %206 = vmatmul.mubr.msk.bf16.vlgmr.msra.gmra.mrb[0].mxu1 %vm107_vm2, %v93_v31 }
 0x1d8   :  { %v145_v33 = vpop.f32.mrb[0].mxu1 }
 0x1d9   :  { %v146_v34 = vadd.f32 %v179_v32, %v145_v33  ;;  %v207_v35 = vpop.f32.mrb[1].mxu1 }
 0x1da   :  { %v148_v36 = vpop.f32.mrb[2].mxu1 }
 0x1db   :  { %151 = vmax.xlane.f32.xlu0 %v146_v34  ;;  %v208_v37 = vpop.f32.mrb[3].mxu1 }
 0x268   :  { %v152_v38 = vpop.xlane.xlu0 %151 }
 0x269   :  { %v153_v39 = vsub.f32 %v146_v34, %v152_v38 }
 0x26b   :  { %v154_v40 = vmul.f32 1.442695, %v153_v39 }
 0x26d   :  { %216 = vpow2.f32 %v154_v40 }
 0x277   :  { %v217_v41 = vpop.eup %216 }
 0x278   :  { %156 = vadd.xlane.f32.xlu0 %v217_v41 }
 0x305   :  { %v157_v42 = vpop.xlane.xlu0 %156 }
 0x306   :  { %218 = vlog2.f32 %v157_v42 }
 0x310   :  { %v219_v43 = vpop.eup %218 }
 0x311   :  { %v159_v44 = vmul.f32 0.6931472, %v219_v43 }
 0x313   :  { %v160_v45 = vsub.f32 %v153_v39, %v159_v44 }
 0x315   :  { %161 = vst [vmem:[#allocation2] sm:$0xff] %v160_v45 }
 0x316   :  { %231 = shalt.err (!%p228_p4)
}
 0x317   :  { %s232_s23 = scalar_lea.hbm %s339_s5, 128 }
 0x318   :  { %p233_p5 = scmp.ne.s32.totalorder %s339_s5, %s232_s23  ;;  %p236_p6 = scmp.lt.u32.totalorder %s232_s23, %s339_s5 }
 0x31a   :  { %p238_p7 = pnand %p236_p6, %p233_p5 }
 0x31c   :  { %241 = shalt.err (!%p238_p7)
}
 0x31d   :  { %171 = dma.vmem_to_hbm [thread:$0]  %s169_s20, 128, %s339_s5, [#allocation3]  }
 0x31e   :  { %242 = dma.done.wait [#allocation3], 128  }
 0x31f   :  { %243 = vsyncadd [#allocation3], 4294967168 }
 0x320   :  { %175 = vsyncpa [#allocation3], 1 }

</bundles_post_ra>
